<compile_context>
chip_gen: v7x
topology: tpu7x:2x2x1
jax: 0.10.0
libtpu: 0.0.40
codegen_flags: <defaults>
</compile_context>

<pallas_src>
import jax
import jax.numpy as jnp
from jax.experimental import pallas as pl
from jax.experimental.pallas import tpu as pltpu

KERNEL = 3
STRIDE = 3   # faithful to the source: nn.Conv2d(in_feat, out_feat, 3, 3, 1, bias=False)
PAD = 1
EPS = 1e-5


def _round_up(x, m):
    return ((x + m - 1) // m) * m


def _tpu_tuning():
    """Returns (vmem_limit_bytes, block_budget_bytes, max_out_rows_per_tile, min_grid_blocks)."""
    try:
        kind = jax.devices()[0].device_kind.lower()
    except Exception:
        kind = ""
    if "v5" in kind or "v6" in kind:
        # 128 MiB physical VMEM: large tiles, fewer grid steps.
        return 96 * 1024 * 1024, 56 * 1024 * 1024, 1024, 1
    # v7x (64 MiB per TC, 2 TCs) and unknown chips: conservative budget,
    # keep >= 2 i-blocks so both TensorCores get work on the "parallel" axis.
    return 40 * 1024 * 1024, 20 * 1024 * 1024, 512, 2


# ----------------------------- Pallas kernel --------------------------------
def _fused_conv_kernel(x_ref, w_ref, o_ref):
    # x_ref : (t_nh, 3, wo_p, 3*C)  bf16  post-BN/ReLU zero-padded activation rows
    # w_ref : (3, 3*C, cout_l)      bf16  conv weight, kernel-row major (VMEM resident)
    # o_ref : (t_nh*wo_p, cout_l)   f32
    x = x_ref[...]
    t_nh, _, wo_p, kc = x.shape

    def tap(kh):
        # wo_p is a multiple of 8, so this collapse is layout-trivial (sublane aligned).
        lhs = x[:, kh, :, :].reshape(t_nh * wo_p, kc)
        return jnp.dot(lhs, w_ref[kh], preferred_element_type=jnp.float32)

    acc = tap(0)
    for kh in range(1, KERNEL):          # static 3-tap loop over kernel rows
        acc = acc + tap(kh)
    o_ref[...] = acc


def _choose_t_nh(nho, wo_p, kc, cout_l, budget, max_rows, min_blocks):
    t = max(1, min(nho, max_rows // wo_p))

    def vmem_need(t_):
        inp = 2 * (t_ * KERNEL * wo_p * kc * 2)      # double-buffered bf16 input block
        wgt = 2 * (KERNEL * kc * cout_l * 2)         # resident bf16 weight
        out = 2 * (t_ * wo_p * cout_l * 4)           # f32 output block
        return inp + wgt + out

    while t > 1 and vmem_need(t) > budget:
        t = max(1, t // 2)
    if min_blocks > 1:
        t = min(t, max(1, -(-nho // min_blocks)))    # guarantee >= min_blocks grid blocks
    return t


def _conv_pallas(act_view, wmat, nho, wo_p, kc, cout_l):
    vmem_limit, budget, max_rows, min_blocks = _tpu_tuning()
    t_nh = _choose_t_nh(nho, wo_p, kc, cout_l, budget, max_rows, min_blocks)
    grid = (pl.cdiv(nho, t_nh),)
    return pl.pallas_call(
        _fused_conv_kernel,
        out_shape=jax.ShapeDtypeStruct((nho * wo_p, cout_l), jnp.float32),
        grid=grid,
        in_specs=[
            pl.BlockSpec((t_nh, KERNEL, wo_p, kc), lambda i: (i, 0, 0, 0)),
            pl.BlockSpec((KERNEL, kc, cout_l), lambda i: (0, 0, 0)),   # resident weight
        ],
        out_specs=pl.BlockSpec((t_nh * wo_p, cout_l), lambda i: (i, 0)),
        compiler_params=pltpu.CompilerParams(
            dimension_semantics=("parallel",),
            vmem_limit_bytes=vmem_limit),
    )(act_view, wmat)


# ----------------------------- glue (plain JAX) ------------------------------
def bn_relu_conv(x_nchw, params):
    """conv(relu(bn(x))): NCHW -> NCHW, spatial shrinks by the stride-3 conv."""
    gamma, beta, rmean, rvar, weight = (params["gamma"], params["beta"],
                                        params["running_mean"], params["running_var"],
                                        params["weight"])
    scale = gamma / jnp.sqrt(rvar + EPS)
    shift = beta - rmean * scale

    n, c, h, w = x_nchw.shape
    c_out = weight.shape[0]
    h_out = (h + 2 * PAD - KERNEL) // STRIDE + 1
    w_out = (w + 2 * PAD - KERNEL) // STRIDE + 1
    w_out_p = _round_up(w_out, 8)   # sublane-align so the in-kernel row collapse is trivial

    # One fused elementwise pass: NCHW->NHWC transpose, folded BN, ReLU, bf16 cast,
    # then zero-pad the conv halo (+ width alignment). Padding AFTER ReLU keeps the
    # halo exactly zero, so the kernel needs no pad masking.
    act = jnp.maximum(jnp.transpose(x_nchw, (0, 2, 3, 1)) * scale + shift, 0.0)
    act = act.astype(jnp.bfloat16)
    pad_b = max(STRIDE * h_out - h - PAD, 0)
    pad_r = max(STRIDE * w_out_p - w - PAD, 0)
    act = jnp.pad(act, ((0, 0), (PAD, pad_b), (PAD, pad_r), (0, 0)))
    act = act[:, :STRIDE * h_out, :STRIDE * w_out_p, :]

    # Metadata-only im2col view: (N*Ho, kh, Wo_p, kw*C).
    kc = KERNEL * c
    act_view = act.reshape(n * h_out, KERNEL, w_out_p, kc)

    # Weight OIHW -> (kh, kw*Cin, Cout); lane-pad Cout only when it is large.
    cout_l = _round_up(c_out, 128) if c_out >= 64 else c_out
    wmat = jnp.transpose(weight, (2, 3, 1, 0)).reshape(KERNEL, kc, c_out)
    if cout_l != c_out:
        wmat = jnp.pad(wmat, ((0, 0), (0, 0), (0, cout_l - c_out)))
    wmat = wmat.astype(jnp.bfloat16)

    out = _conv_pallas(act_view, wmat, n * h_out, w_out_p, kc, cout_l)   # (N*Ho*Wo_p, cout_l) f32
    out = out.reshape(n, h_out, w_out_p, cout_l)[:, :, :w_out, :c_out]
    return jnp.transpose(out, (0, 3, 1, 2))                              # NCHW


def dense_basic_block_forward(x_nchw, params):
    """torch.cat([x, conv(relu(bn(x)))], dim=1) — requires matching spatial dims."""
    out = bn_relu_conv(x_nchw, params)
    return jnp.concatenate([x_nchw, out.astype(x_nchw.dtype)], axis=1)


# ----------------------------- pure-JAX reference ----------------------------
def bn_relu_conv_ref(x_nchw, params):
    scale = params["gamma"] / jnp.sqrt(params["running_var"] + EPS)
    shift = params["beta"] - params["running_mean"] * scale
    act = jnp.maximum(x_nchw * scale[None, :, None, None] + shift[None, :, None, None], 0.0)
    return jax.lax.conv_general_dilated(
        act, params["weight"], window_strides=(STRIDE, STRIDE),
        padding=((PAD, PAD), (PAD, PAD)),
        dimension_numbers=("NCHW", "OIHW", "NCHW"))


def dense_basic_block_ref(x_nchw, params):
    return jnp.concatenate([x_nchw, bn_relu_conv_ref(x_nchw, params)], axis=1)


# ----------------------------- params & demo ---------------------------------
def init_params(in_feat, out_feat, key):
    k1, k2, k3, k4, k5 = jax.random.split(key, 5)
    return dict(
        gamma=1.0 + 0.1 * jax.random.normal(k1, (in_feat,), jnp.float32),
        beta=0.1 * jax.random.normal(k2, (in_feat,), jnp.float32),
        running_mean=0.1 * jax.random.normal(k3, (in_feat,), jnp.float32),
        running_var=1.0 + 0.1 * jax.random.uniform(k4, (in_feat,), jnp.float32),
        weight=0.1 * jax.random.normal(k5, (out_feat, in_feat, KERNEL, KERNEL), jnp.float32),
    )


if __name__ == "__main__":
    key = jax.random.PRNGKey(0)
    kx, kp = jax.random.split(key)
    in_feat, out_feat = 4, 8
    params = init_params(in_feat, out_feat, kp)

    # Full forward: with the source's stride-3 conv, torch.cat([x, out], 1) is only
    # shape-valid when the conv preserves spatial size, i.e. H = W = 1.
    x_small = jax.random.normal(kx, (2, in_feat, 1, 1), jnp.float32)
    y = jax.block_until_ready(dense_basic_block_forward(x_small, params))
    y_ref = dense_basic_block_ref(x_small, params)
    assert y.shape == (2, in_feat + out_feat, 1, 1)
    assert bool(jnp.allclose(y, y_ref, atol=3e-2, rtol=3e-2))   # bf16 MXU tolerance

    # Sanity check of the fused bn->relu->conv Pallas pipeline at a realistic spatial
    # size (concat omitted because stride 3 shrinks the spatial dims).
    x_big = jax.random.normal(kx, (2, in_feat, 16, 16), jnp.float32)
    o_big = jax.block_until_ready(bn_relu_conv(x_big, params))
    o_big_ref = bn_relu_conv_ref(x_big, params)
    assert o_big.shape == (2, out_feat, 6, 6)
    assert bool(jnp.allclose(o_big, o_big_ref, atol=3e-2, rtol=3e-2))

    print("KERNEL_OK")
</pallas_src>

<mosaic_0001>
module attributes {stable_mosaic.version = 11 : i64} {
  func.func @_fused_conv_kernel(%arg0: i32, %arg1: memref<1x3x8x12xbf16, #tpu.memory_space<vmem>>, %arg2: memref<3x12x8xbf16, #tpu.memory_space<vmem>>, %arg3: memref<8x8xf32, #tpu.memory_space<vmem>>) attributes {dimension_semantics = [#tpu.dimension_semantics<parallel>], iteration_bounds = array<i64: 2>, scalar_prefetch = 0 : i64, scratch_operands = 0 : i64, tpu.core_type = #tpu.core_type<tc>, window_params = [{transform_indices = @transform_0, window_bounds = array<i64: 1, 3, 8, 12>}, {pipeline_mode = #tpu.pipeline_mode<synchronous>, transform_indices = @transform_1, window_bounds = array<i64: 3, 12, 8>}, {transform_indices = @transform_2, window_bounds = array<i64: 8, 8>}]} {
    %c0 = arith.constant 0 : index
    %c0_0 = arith.constant 0 : index
    %c0_1 = arith.constant 0 : index
    %c0_2 = arith.constant 0 : index
    %0 = vector.load %arg1[%c0, %c0_0, %c0_1, %c0_2] : memref<1x3x8x12xbf16, #tpu.memory_space<vmem>>, vector<1x3x8x12xbf16>
    %1 = vector.extract_strided_slice %0 {offsets = [0, 0, 0, 0], sizes = [1, 1, 8, 12], strides = [1, 1, 1, 1]} : vector<1x3x8x12xbf16> to vector<1x1x8x12xbf16>
    %2 = vector.shape_cast %1 : vector<1x1x8x12xbf16> to vector<1x8x12xbf16>
    %3 = vector.shape_cast %2 : vector<1x8x12xbf16> to vector<8x12xbf16>
    %c0_3 = arith.constant 0 : index
    %c0_4 = arith.constant 0 : index
    %c0_5 = arith.constant 0 : index
    %4 = vector.load %arg2[%c0_3, %c0_4, %c0_5] : memref<3x12x8xbf16, #tpu.memory_space<vmem>>, vector<1x12x8xbf16>
    %5 = vector.shape_cast %4 : vector<1x12x8xbf16> to vector<12x8xbf16>
    %cst = arith.constant dense<0.000000e+00> : vector<8x8xf32>
    %6 = tpu.matmul %3, %5, %cst {dimension_numbers = #tpu.dot_dimension_numbers<[1], [0], [0], [1], [0, 0, 1, 1], [], []>} : vector<8x12xbf16>, vector<12x8xbf16>, vector<8x8xf32> -> vector<8x8xf32>
    %7 = vector.extract_strided_slice %0 {offsets = [0, 1, 0, 0], sizes = [1, 1, 8, 12], strides = [1, 1, 1, 1]} : vector<1x3x8x12xbf16> to vector<1x1x8x12xbf16>
    %8 = vector.shape_cast %7 : vector<1x1x8x12xbf16> to vector<1x8x12xbf16>
    %9 = vector.shape_cast %8 : vector<1x8x12xbf16> to vector<8x12xbf16>
    %c1 = arith.constant 1 : index
    %c0_6 = arith.constant 0 : index
    %c0_7 = arith.constant 0 : index
    %10 = vector.load %arg2[%c1, %c0_6, %c0_7] : memref<3x12x8xbf16, #tpu.memory_space<vmem>>, vector<1x12x8xbf16>
    %11 = vector.shape_cast %10 : vector<1x12x8xbf16> to vector<12x8xbf16>
    %cst_8 = arith.constant dense<0.000000e+00> : vector<8x8xf32>
    %12 = tpu.matmul %9, %11, %cst_8 {dimension_numbers = #tpu.dot_dimension_numbers<[1], [0], [0], [1], [0, 0, 1, 1], [], []>} : vector<8x12xbf16>, vector<12x8xbf16>, vector<8x8xf32> -> vector<8x8xf32>
    %13 = arith.addf %6, %12 : vector<8x8xf32>
    %14 = vector.extract_strided_slice %0 {offsets = [0, 2, 0, 0], sizes = [1, 1, 8, 12], strides = [1, 1, 1, 1]} : vector<1x3x8x12xbf16> to vector<1x1x8x12xbf16>
    %15 = vector.shape_cast %14 : vector<1x1x8x12xbf16> to vector<1x8x12xbf16>
    %16 = vector.shape_cast %15 : vector<1x8x12xbf16> to vector<8x12xbf16>
    %c2 = arith.constant 2 : index
    %c0_9 = arith.constant 0 : index
    %c0_10 = arith.constant 0 : index
    %17 = vector.load %arg2[%c2, %c0_9, %c0_10] : memref<3x12x8xbf16, #tpu.memory_space<vmem>>, vector<1x12x8xbf16>
    %18 = vector.shape_cast %17 : vector<1x12x8xbf16> to vector<12x8xbf16>
    %cst_11 = arith.constant dense<0.000000e+00> : vector<8x8xf32>
    %19 = tpu.matmul %16, %18, %cst_11 {dimension_numbers = #tpu.dot_dimension_numbers<[1], [0], [0], [1], [0, 0, 1, 1], [], []>} : vector<8x12xbf16>, vector<12x8xbf16>, vector<8x8xf32> -> vector<8x8xf32>
    %20 = arith.addf %13, %19 : vector<8x8xf32>
    %c0_12 = arith.constant 0 : index
    %c0_13 = arith.constant 0 : index
    %21 = vector.load %arg3[%c0_12, %c0_13] : memref<8x8xf32, #tpu.memory_space<vmem>>, vector<8x8xf32>
    tpu.vector_store %arg3[%c0_12, %c0_13], %20 {strides = array<i32>} : memref<8x8xf32, #tpu.memory_space<vmem>>, vector<8x8xf32>,
    return
  }
  func.func @transform_0(%arg0: i32) -> (i32, i32, i32, i32) {
    %c0_i32 = arith.constant 0 : i32
    %c0_i32_0 = arith.constant 0 : i32
    %c0_i32_1 = arith.constant 0 : i32
    %c0_i32_2 = arith.constant 0 : i32
    return %arg0, %c0_i32, %c0_i32_0, %c0_i32_1 : i32, i32, i32, i32
  }
  func.func @transform_1(%arg0: i32) -> (i32, i32, i32) {
    %c0_i32 = arith.constant 0 : i32
    %c0_i32_0 = arith.constant 0 : i32
    %c0_i32_1 = arith.constant 0 : i32
    %c0_i32_2 = arith.constant 0 : i32
    return %c0_i32, %c0_i32_0, %c0_i32_1 : i32, i32, i32
  }
  func.func @transform_2(%arg0: i32) -> (i32, i32) {
    %c0_i32 = arith.constant 0 : i32
    %c0_i32_0 = arith.constant 0 : i32
    return %arg0, %c0_i32 : i32, i32
  }
}

</mosaic_0001>

<bundles_post_ra>
// kernel: tpu_custom_call.1
= control target key start
LH: loop header
LB: loop body
LE: loop exit
PB: predicated region body
PF: predicated region fallthrough
CT: control target
= control target key end

     0   :  { %s452_s9 = smov 0   ;;  %s484_s0 = inlined_call_operand.vmem [shape: bf16[2,3,8,12], index: 0, kind: input, shape index: {}]   ;;  %s485_s1 = inlined_call_operand.vmem [shape: bf16[3,12,8], index: 1, kind: input, shape index: {}]   ;;  %s486_s2 = inlined_call_operand.vmem [shape: f32[16,8], index: 2, kind: output, shape index: {}]  }
   0x1 LB: > { %s365_s10 = sadd.s32 4294967295, %s433_s9   ;;  %p369_p0 = scmp.ge.s32.totalorder %s433_s9, 1  ;;  %s433_s9 = sphi %s452_s9, %s12_s9  }
   0x2   : > { %p112_p1 = scmp.lt.s32.totalorder %s433_s9, 3 }
   0x4   : > { %p113_p2 = pnand %p369_p0, %p112_p1 }
   0x5   : > { %vm160_vm0 = vcmask (!%p113_p2), 1045504   ;;  %v435_v0 = vmov (!%p113_p2), 0.0   ;;  %v424_v1 = vld [vmem:[%s485_s1] sm:$0x3f] (!%p113_p2)   ;;  %p133_p3 = scmp.lt.s32.totalorder (!%p113_p2), %s365_s10, 1  ;;  %vm436_vm1 = vmmov (!%p113_p2), 0  }
   0x6   : > { %116 = sbr.rel (%p113_p2) target bundleno = 245 (0xf5), region = 28  ;;  %396 = vmatprep.subr.bf16.mxu0 (!%p113_p2), %v435_v0  ;;  %390 = vmatprep.subr.bf16.mxu1 (!%p113_p2), %v435_v0  ;;  %v425_v2 = vld [vmem:[%s485_s1 + $0x10] sm:$0x3f] (!%p113_p2)   ;;  %v213_v3 = vsel (!%p113_p2), %vm160_vm0, %v424_v1, 0  ;;  %v426_v4 = vld [vmem:[%s485_s1 + $0x8] sm:$0x3f] (!%p113_p2)  }
   0x7   : > { %398 = vmatprep.mubr.msk.bf16.mxu0 (!%p113_p2), %vm436_vm1, %v435_v0  ;;  %392 = vmatprep.mubr.msk.bf16.mxu1 (!%p113_p2), %vm436_vm1, %v435_v0  ;;  %vm156_vm2 = vcmask (!%p113_p2), 97280   ;;  %v162_v5 = vsel (!%p113_p2), %vm160_vm0, %v426_v4, 0  ;;  %v267_v6 = vsel (!%p113_p2), %vm160_vm0, %v425_v2, 0  ;;  %vm310_vm3 = vcmask (!%p113_p2), 64512  }
   0x8   : > { %397 = vmatpush3.bf16.msra.mxu0 (!%p113_p2), %v213_v3  ;;  %391 = vmatpush3.bf16.msra.mxu1 (!%p113_p2), %v162_v5 }
   0x9   : > { %402 = vmatprep.subr.bf16.mxu0 (!%p113_p2), %v435_v0 }
   0xd   : > { %s488_s10 = smov (!%p133_p3, %s365_s10), 1 }
   0xe   : > { %s413_s17 = smul.u32 12, %s488_s10  ;;  %s371_s21 = sshll.u32 %s488_s10, 3 }
   0xf   : > { %s141_s24 = scalar_lea.vmem %s486_s2, %s371_s21 }
  0x10   : > { %s137_s20 = scalar_lea.vmem %s484_s0, %s413_s17 }
  0x11   : > { %v143_v7 = vld [vmem:[%s137_s20] sm:$0xf]  ;;  %v144_v8 = vld [vmem:[%s137_s20 + $0x4] sm:$0xf]  ;;  %v145_v9 = vld [vmem:[%s137_s20 + $0x8] sm:$0xf] }
  0x12   : > { %399 = vmatmul.mubr.msk.bf16.vlgmr.msra.gmra.mrb[0].mxu0 %vm156_vm2, %v143_v7  ;;  %393 = vmatmul.mubr.msk.bf16.vlgmr.msra.gmra.mrb[0].mxu1 %vm156_vm2, %v144_v8 }
  0x13   : > { %403 = vmatpush3.bf16.msra.mxu0 %v267_v6  ;;  %404 = vmatprep.mubr.msk.bf16.mxu0 %vm436_vm1, %v435_v0 }
  0x1e   : > { %405 = vmatmul.mubr.msk.bf16.vlgmr.msra.gmra.mrb[0].mxu0 %vm156_vm2, %v145_v9 }
  0xe5   : > { %v198_v10 = vpop.f32.mrb[0].mxu1 }
  0xe6   : > { %v394_v11 = vpop.f32.mrb[1].mxu1 }
  0xe7   : > { %v201_v12 = vpop.f32.mrb[2].mxu1 }
  0xe8   : > { %v395_v13 = vpop.f32.mrb[3].mxu1 }
  0xf1   : > { %v303_v14 = vpop.f32.mrb[0].mxu0 }
  0xf2   : > { %v408_v15 = vadd.f32 %v303_v14, %v198_v10  ;;  %v406_v16 = vpop.f32.mrb[1].mxu0 }
  0xf3   : > { %v306_v17 = vpop.f32.mrb[2].mxu0 }
  0xf4   : > { %311 = vst.msk [vmem:[%s141_s24] sm:$0xff] %vm310_vm3, %v408_v15  ;;  %v407_v18 = vpop.f32.mrb[3].mxu0 }
  0xf5 PF: > { %s12_s9 = sadd.s32 1, %s433_s9  }
  0xf6   : > { %p9_p4 = scmp.ge.s32.totalorder %s12_s9, 4  }
  0xf8   :  { %11 = sbr.rel (!%p9_p4) target bundleno = 1 (0x1), region = 60 }

</bundles_post_ra>
